<compile_context>
chip_gen: v7x
topology: tpu7x:2x2x1
jax: 0.10.0
libtpu: 0.0.40
codegen_flags: <defaults>
</compile_context>

<pallas_src>
import jax
import jax.numpy as jnp
from jax.experimental import pallas as pl
from jax.experimental.pallas import tpu as pltpu


# --------------------------- small helpers ----------------------------------


def _round_up(n, m):
    return ((n + m - 1) // m) * m


def _pad2(x, rows, cols):
    return jnp.pad(x, ((0, rows - x.shape[0]), (0, cols - x.shape[1])))


def _pad_bias(b, cols):
    """(1, F) / (F,) bias -> (8, cols) f32 tile (full-sublane, no 1-row block)."""
    b = jnp.asarray(b, jnp.float32).reshape(1, -1)
    b = jnp.pad(b, ((0, 0), (0, cols - b.shape[1])))
    return jnp.broadcast_to(b, (8, cols))


def _default_tile_rows():
    """256-row blocks fill the 256x256 MXU on v6e/v7x; 128 is right for v5e."""
    try:
        kind = jax.devices()[0].device_kind.lower()
    except Exception:
        kind = ""
    return 128 if "v5" in kind else 256


def _masked_log_softmax(z, num_valid):
    """log_softmax over the first `num_valid` lanes only (rest is lane pad)."""
    col = jax.lax.broadcasted_iota(jnp.int32, z.shape, dimension=1)
    valid = col < num_valid
    zm = jnp.where(valid, z, -jnp.inf)
    m = jnp.max(zm, axis=1, keepdims=True)
    p = jnp.where(valid, jnp.exp(z - m), 0.0)
    s = jnp.sum(p, axis=1, keepdims=True)
    return z - (m + jnp.log(s))


# ----------------------------- Pallas kernels --------------------------------


def make_fused_kernel(contract_a_first: bool, fold_w2: bool, num_classes: int):
    """Whole forward in one body (used when the graph fits one row block)."""

    def kernel(a_ref, x_ref, w1_ref, b1_ref, w2_ref, b2_ref, out_ref):
        a = a_ref[...]                                       # [Np, Np] bf16
        # ---- layer 1: z1 = A @ X @ W1 (association chosen by FLOPs) ----
        if contract_a_first:                                 # Fin <= hidden
            ax = jnp.dot(a, x_ref[...], preferred_element_type=jnp.float32)
            z1 = jnp.dot(ax.astype(jnp.bfloat16), w1_ref[...],
                         preferred_element_type=jnp.float32)
        else:                                                # hidden < Fin
            xw = jnp.dot(x_ref[...], w1_ref[...],
                         preferred_element_type=jnp.float32)
            z1 = jnp.dot(a, xw.astype(jnp.bfloat16),
                         preferred_element_type=jnp.float32)
        h = jnp.maximum(z1 + b1_ref[...][0:1, :], 0.0)       # bias + ReLU (f32)
        # Dropout(p=0.5) in eval mode (self.training == False) is identity.
        # TODO(synk): training-mode dropout would need pltpu.prng_random_bits.
        hb = h.astype(jnp.bfloat16)
        # ---- layer 2: z2 = A @ h @ W2 (association chosen by FLOPs) ----
        if fold_w2:                                          # C <= hidden
            t = jnp.dot(hb, w2_ref[...], preferred_element_type=jnp.float32)
            z2 = jnp.dot(a, t.astype(jnp.bfloat16),
                         preferred_element_type=jnp.float32)
        else:                                                # hidden < C
            ah = jnp.dot(a, hb, preferred_element_type=jnp.float32)
            z2 = jnp.dot(ah.astype(jnp.bfloat16), w2_ref[...],
                         preferred_element_type=jnp.float32)
        z2 = z2 + b2_ref[...][0:1, :]
        out_ref[...] = _masked_log_softmax(z2, num_classes)

    return kernel


def make_layer1_block_kernel(contract_a_first: bool, fold_w2: bool):
    """Row-block layer 1: t_blk = [ReLU(A_blk@X@W1 + b1)] (@ W2 if folded)."""

    def epilogue(z, b1_row, w2_ref, t_ref):
        h = jnp.maximum(z + b1_row, 0.0)
        # Dropout(p=0.5) in eval mode is identity.
        if fold_w2:
            h = jnp.dot(h.astype(jnp.bfloat16), w2_ref[...],
                        preferred_element_type=jnp.float32)
        t_ref[...] = h.astype(t_ref.dtype)

    if contract_a_first and fold_w2:
        def kernel(a_ref, x_ref, w1_ref, b1_ref, w2_ref, t_ref):
            ax = jnp.dot(a_ref[...], x_ref[...],
                         preferred_element_type=jnp.float32)
            z = jnp.dot(ax.astype(jnp.bfloat16), w1_ref[...],
                        preferred_element_type=jnp.float32)
            epilogue(z, b1_ref[...][0:1, :], w2_ref, t_ref)
    elif contract_a_first and not fold_w2:
        def kernel(a_ref, x_ref, w1_ref, b1_ref, t_ref):
            ax = jnp.dot(a_ref[...], x_ref[...],
                         preferred_element_type=jnp.float32)
            z = jnp.dot(ax.astype(jnp.bfloat16), w1_ref[...],
                        preferred_element_type=jnp.float32)
            epilogue(z, b1_ref[...][0:1, :], None, t_ref)
    elif (not contract_a_first) and fold_w2:
        # X @ W1 is hoisted to the wrapper; xw_ref is the precomputed product.
        def kernel(a_ref, xw_ref, b1_ref, w2_ref, t_ref):
            z = jnp.dot(a_ref[...], xw_ref[...],
                        preferred_element_type=jnp.float32)
            epilogue(z, b1_ref[...][0:1, :], w2_ref, t_ref)
    else:
        def kernel(a_ref, xw_ref, b1_ref, t_ref):
            z = jnp.dot(a_ref[...], xw_ref[...],
                        preferred_element_type=jnp.float32)
            epilogue(z, b1_ref[...][0:1, :], None, t_ref)

    return kernel


def make_layer2_block_kernel(fold_w2: bool, num_classes: int):
    """Row-block layer 2: out_blk = log_softmax(A_blk @ t (+ @W2) + b2)."""

    if fold_w2:
        def kernel(a_ref, t_ref, b2_ref, out_ref):
            z = jnp.dot(a_ref[...], t_ref[...],
                        preferred_element_type=jnp.float32)
            z = z + b2_ref[...][0:1, :]
            out_ref[...] = _masked_log_softmax(z, num_classes)
    else:
        def kernel(a_ref, h_ref, w2_ref, b2_ref, out_ref):
            ah = jnp.dot(a_ref[...], h_ref[...],
                         preferred_element_type=jnp.float32)
            z = jnp.dot(ah.astype(jnp.bfloat16), w2_ref[...],
                        preferred_element_type=jnp.float32)
            z = z + b2_ref[...][0:1, :]
            out_ref[...] = _masked_log_softmax(z, num_classes)

    return kernel


# --------------------------------- wrapper -----------------------------------


def prepare_gcn(a_hat, x, w1, b1, w2, b2, *, tile_rows=None):
    """Pad/cast operands ONCE and build the Pallas forward closure.

    Returns a zero-argument callable computing the [N, C] log-probabilities.
    The padded bf16 operands (incl. the N^2 adjacency) are cached inside the
    closure so repeated forwards do not re-pad / re-cast.
    """
    n, fin = x.shape
    hidden = w1.shape[1]
    c = w2.shape[1]

    f_pad = _round_up(fin, 128)
    h_pad = _round_up(hidden, 128)
    c_pad = _round_up(c, 128)
    n_pad = _round_up(n, 128)

    tm = tile_rows or _default_tile_rows()
    if n_pad % tm != 0:          # don't add extra row padding just to use 256
        tm = 128
    n_blocks = n_pad // tm

    contract_a_first = f_pad <= h_pad       # layer 1: (A@X)@W1 vs A@(X@W1)
    fold_w2 = c_pad <= h_pad                # layer 2: fold W2 into layer-1 tail

    # bf16 matmul operands (f32 accumulation inside the kernels), f32 biases.
    a_p = _pad2(jnp.asarray(a_hat, jnp.float32), n_pad, n_pad).astype(jnp.bfloat16)
    x_p = _pad2(jnp.asarray(x, jnp.float32), n_pad, f_pad).astype(jnp.bfloat16)
    w1_p = _pad2(jnp.asarray(w1, jnp.float32), f_pad, h_pad).astype(jnp.bfloat16)
    w2_p = _pad2(jnp.asarray(w2, jnp.float32), h_pad, c_pad).astype(jnp.bfloat16)
    b1_p = _pad_bias(b1, h_pad)
    b2_p = _pad_bias(b2, c_pad)

    # ----------------------- fused single-call path --------------------------
    if n_blocks == 1:
        flops_l1 = (2 * (n_pad * n_pad * f_pad + n_pad * f_pad * h_pad)
                    if contract_a_first
                    else 2 * (n_pad * f_pad * h_pad + n_pad * n_pad * h_pad))
        flops_l2 = (2 * (n_pad * h_pad * c_pad + n_pad * n_pad * c_pad)
                    if fold_w2
                    else 2 * (n_pad * n_pad * h_pad + n_pad * h_pad * c_pad))
        bytes_acc = (a_p.size * 2 + x_p.size * 2 + w1_p.size * 2 + w2_p.size * 2
                     + b1_p.size * 4 + b2_p.size * 4 + n_pad * c_pad * 4)

        fused = pl.pallas_call(
            make_fused_kernel(contract_a_first, fold_w2, c),
            out_shape=jax.ShapeDtypeStruct((n_pad, c_pad), jnp.float32),
            grid=(1,),
            in_specs=[
                pl.BlockSpec((n_pad, n_pad), lambda i: (0, 0)),   # A_hat
                pl.BlockSpec((n_pad, f_pad), lambda i: (0, 0)),   # X
                pl.BlockSpec((f_pad, h_pad), lambda i: (0, 0)),   # W1
                pl.BlockSpec((8, h_pad), lambda i: (0, 0)),       # b1
                pl.BlockSpec((h_pad, c_pad), lambda i: (0, 0)),   # W2
                pl.BlockSpec((8, c_pad), lambda i: (0, 0)),       # b2
            ],
            out_specs=pl.BlockSpec((n_pad, c_pad), lambda i: (0, 0)),
            compiler_params=pltpu.CompilerParams(
                dimension_semantics=("arbitrary",)),
            cost_estimate=pl.CostEstimate(
                flops=flops_l1 + flops_l2,
                transcendentals=n_pad * c_pad,
                bytes_accessed=bytes_acc),
        )

        def forward():
            return fused(a_p, x_p, w1_p, b1_p, w2_p, b2_p)[:n, :c]

        return forward

    # ----------------- blocked two-call path (n_blocks > 1) ------------------
    # TODO(synk): for graphs whose resident operands (X / t, tm x N_pad A row
    # block) exceed the scoped-VMEM limit (32 MiB default on v7x), add a
    # K-tiling 'arbitrary' grid axis over A's columns with an f32 accumulator.
    grid = (n_blocks,)
    t_cols = c_pad if fold_w2 else h_pad

    # Hoist the grid-invariant X @ W1 (done once here, not per row block).
    if not contract_a_first:
        xw_p = jnp.dot(x_p, w1_p,
                       preferred_element_type=jnp.float32).astype(jnp.bfloat16)

    if contract_a_first:
        l1_in_specs = [
            pl.BlockSpec((tm, n_pad), lambda i: (i, 0)),      # A row block
            pl.BlockSpec((n_pad, f_pad), lambda i: (0, 0)),   # X (resident)
            pl.BlockSpec((f_pad, h_pad), lambda i: (0, 0)),   # W1
            pl.BlockSpec((8, h_pad), lambda i: (0, 0)),       # b1
        ]
        l1_args = [a_p, x_p, w1_p, b1_p]
        l1_flops = 2 * (n_pad * n_pad * f_pad + n_pad * f_pad * h_pad)
        l1_bytes = a_p.size * 2 + x_p.size * 2 + w1_p.size * 2 + b1_p.size * 4
    else:
        l1_in_specs = [
            pl.BlockSpec((tm, n_pad), lambda i: (i, 0)),      # A row block
            pl.BlockSpec((n_pad, h_pad), lambda i: (0, 0)),   # X@W1 (hoisted)
            pl.BlockSpec((8, h_pad), lambda i: (0, 0)),       # b1
        ]
        l1_args = [a_p, xw_p, b1_p]
        l1_flops = 2 * n_pad * n_pad * h_pad
        l1_bytes = a_p.size * 2 + xw_p.size * 2 + b1_p.size * 4
    if fold_w2:
        l1_in_specs.append(pl.BlockSpec((h_pad, c_pad), lambda i: (0, 0)))
        l1_args.append(w2_p)
        l1_flops += 2 * n_pad * h_pad * c_pad
        l1_bytes += w2_p.size * 2
    l1_bytes += n_pad * t_cols * 2

    layer1 = pl.pallas_call(
        make_layer1_block_kernel(contract_a_first, fold_w2),
        out_shape=jax.ShapeDtypeStruct((n_pad, t_cols), jnp.bfloat16),
        grid=grid,
        in_specs=l1_in_specs,
        out_specs=pl.BlockSpec((tm, t_cols), lambda i: (i, 0)),
        compiler_params=pltpu.CompilerParams(
            dimension_semantics=("parallel",)),
        cost_estimate=pl.CostEstimate(
            flops=l1_flops, transcendentals=0, bytes_accessed=l1_bytes),
    )

    if fold_w2:
        l2_in_specs = [
            pl.BlockSpec((tm, n_pad), lambda i: (i, 0)),      # A row block
            pl.BlockSpec((n_pad, c_pad), lambda i: (0, 0)),   # t (resident)
            pl.BlockSpec((8, c_pad), lambda i: (0, 0)),       # b2
        ]
        l2_flops = 2 * n_pad * n_pad * c_pad
        l2_bytes = (a_p.size * 2 + n_pad * c_pad * 2 + b2_p.size * 4
                    + n_pad * c_pad * 4)
    else:
        l2_in_specs = [
            pl.BlockSpec((tm, n_pad), lambda i: (i, 0)),      # A row block
            pl.BlockSpec((n_pad, h_pad), lambda i: (0, 0)),   # h (resident)
            pl.BlockSpec((h_pad, c_pad), lambda i: (0, 0)),   # W2
            pl.BlockSpec((8, c_pad), lambda i: (0, 0)),       # b2
        ]
        l2_flops = 2 * (n_pad * n_pad * h_pad + n_pad * h_pad * c_pad)
        l2_bytes = (a_p.size * 2 + n_pad * h_pad * 2 + w2_p.size * 2
                    + b2_p.size * 4 + n_pad * c_pad * 4)

    layer2 = pl.pallas_call(
        make_layer2_block_kernel(fold_w2, c),
        out_shape=jax.ShapeDtypeStruct((n_pad, c_pad), jnp.float32),
        grid=grid,
        in_specs=l2_in_specs,
        out_specs=pl.BlockSpec((tm, c_pad), lambda i: (i, 0)),
        compiler_params=pltpu.CompilerParams(
            dimension_semantics=("parallel",)),
        cost_estimate=pl.CostEstimate(
            flops=l2_flops, transcendentals=n_pad * c_pad,
            bytes_accessed=l2_bytes),
    )

    def forward():
        t = layer1(*l1_args)
        if fold_w2:
            out_p = layer2(a_p, t, b2_p)
        else:
            out_p = layer2(a_p, t, w2_p, b2_p)
        return out_p[:n, :c]

    return forward


def gcn_forward(a_hat, x, w1, b1, w2, b2):
    """One-shot convenience wrapper (pads/casts every call; prefer prepare_gcn)."""
    return prepare_gcn(a_hat, x, w1, b1, w2, b2)()


# ------------------------------ JAX glue --------------------------------------


def build_normalized_adjacency(edge_index, num_nodes):
    """Dense GCN normalization: D^-1/2 (A + I) D^-1/2 (plain-JAX glue)."""
    src, dst = edge_index[0], edge_index[1]
    a = jnp.zeros((num_nodes, num_nodes), jnp.float32)
    a = a.at[src, dst].set(1.0)
    a = a.at[dst, src].set(1.0)                       # treat as undirected
    eye = jnp.eye(num_nodes, dtype=jnp.float32)
    a = a * (1.0 - eye) + eye                         # exactly one self loop
    deg = jnp.sum(a, axis=1)
    d_inv_sqrt = 1.0 / jnp.sqrt(jnp.maximum(deg, 1e-12))
    return a * d_inv_sqrt[:, None] * d_inv_sqrt[None, :]


def glorot(key, shape):
    fan_in, fan_out = shape
    limit = jnp.sqrt(6.0 / (fan_in + fan_out))
    return jax.random.uniform(key, shape, jnp.float32, -limit, limit)


def gcn_reference(a_hat, x, w1, b1, w2, b2):
    """Pure-JAX f32 reference (eval-mode dropout = identity)."""
    h = jnp.maximum(a_hat @ x @ w1 + b1, 0.0)
    z = a_hat @ h @ w2 + b2
    return jax.nn.log_softmax(z, axis=1)


if __name__ == "__main__":
    key = jax.random.PRNGKey(0)

    def make_case(k, num_nodes, input_fea, hidden, output_fea, num_edges):
        k_x, k_e1, k_e2, k_w1, k_w2 = jax.random.split(k, 5)
        x = jax.random.normal(k_x, (num_nodes, input_fea), jnp.float32)
        edge_index = jnp.stack(
            [jax.random.randint(k_e1, (num_edges,), 0, num_nodes),
             jax.random.randint(k_e2, (num_edges,), 0, num_nodes)], axis=0)
        w1 = glorot(k_w1, (input_fea, hidden))
        b1 = jnp.zeros((1, hidden), jnp.float32)
        w2 = glorot(k_w2, (hidden, output_fea))
        b2 = jnp.zeros((1, output_fea), jnp.float32)
        a_hat = build_normalized_adjacency(edge_index, num_nodes)
        return a_hat, x, w1, b1, w2, b2

    k1, k2 = jax.random.split(key)

    # Case 1 — Net(input_fea=16, hidden=32, output_fea=8), N=64:
    # single row block -> fused one-kernel path (no HBM round trip for h).
    ops1 = make_case(k1, 64, 16, 32, 8, 128)
    fwd1 = prepare_gcn(*ops1)               # pad/cast cached across forwards
    out1 = jax.block_until_ready(fwd1())
    ref1 = gcn_reference(*ops1)
    assert out1.shape == (64, 8)
    assert bool(jnp.all(jnp.abs(jnp.sum(jnp.exp(out1), axis=1) - 1.0) < 1e-3))
    assert float(jnp.max(jnp.abs(out1 - ref1))) < 0.25   # bf16-MXU tolerance

    # Case 2 — N=300, Fin=200 > hidden=64, C=7: blocked row-parallel path with
    # hoisted X@W1 and W2 folded into layer 1's epilogue.
    ops2 = make_case(k2, 300, 200, 64, 7, 1200)
    fwd2 = prepare_gcn(*ops2)
    out2 = jax.block_until_ready(fwd2())
    ref2 = gcn_reference(*ops2)
    assert out2.shape == (300, 7)
    assert bool(jnp.all(jnp.abs(jnp.sum(jnp.exp(out2), axis=1) - 1.0) < 1e-3))
    assert float(jnp.max(jnp.abs(out2 - ref2))) < 0.25

    print("KERNEL_OK")
</pallas_src>

<mosaic_0001>
module attributes {stable_mosaic.version = 11 : i64} {
  func.func @kernel(%arg0: i32, %arg1: memref<128x128xbf16, #tpu.memory_space<vmem>>, %arg2: memref<128x128xbf16, #tpu.memory_space<vmem>>, %arg3: memref<128x128xbf16, #tpu.memory_space<vmem>>, %arg4: memref<8x128xf32, #tpu.memory_space<vmem>>, %arg5: memref<128x128xbf16, #tpu.memory_space<vmem>>, %arg6: memref<8x128xf32, #tpu.memory_space<vmem>>, %arg7: memref<128x128xf32, #tpu.memory_space<vmem>>) attributes {dimension_semantics = [#tpu.dimension_semantics<arbitrary>], iteration_bounds = array<i64: 1>, scalar_prefetch = 0 : i64, scratch_operands = 0 : i64, tpu.core_type = #tpu.core_type<tc>, window_params = [{pipeline_mode = #tpu.pipeline_mode<synchronous>, transform_indices = @transform_0, window_bounds = array<i64: 128, 128>}, {pipeline_mode = #tpu.pipeline_mode<synchronous>, transform_indices = @transform_1, window_bounds = array<i64: 128, 128>}, {pipeline_mode = #tpu.pipeline_mode<synchronous>, transform_indices = @transform_2, window_bounds = array<i64: 128, 128>}, {pipeline_mode = #tpu.pipeline_mode<synchronous>, transform_indices = @transform_3, window_bounds = array<i64: 8, 128>}, {pipeline_mode = #tpu.pipeline_mode<synchronous>, transform_indices = @transform_4, window_bounds = array<i64: 128, 128>}, {pipeline_mode = #tpu.pipeline_mode<synchronous>, transform_indices = @transform_5, window_bounds = array<i64: 8, 128>}, {pipeline_mode = #tpu.pipeline_mode<synchronous>, transform_indices = @transform_6, window_bounds = array<i64: 128, 128>}]} {
    %c0 = arith.constant 0 : index
    %c0_0 = arith.constant 0 : index
    %0 = vector.load %arg1[%c0, %c0_0] : memref<128x128xbf16, #tpu.memory_space<vmem>>, vector<128x128xbf16>
    %c0_1 = arith.constant 0 : index
    %c0_2 = arith.constant 0 : index
    %1 = vector.load %arg2[%c0_1, %c0_2] : memref<128x128xbf16, #tpu.memory_space<vmem>>, vector<128x128xbf16>
    %cst = arith.constant dense<0.000000e+00> : vector<128x128xf32>
    %2 = tpu.matmul %0, %1, %cst {dimension_numbers = #tpu.dot_dimension_numbers<[1], [0], [0], [1], [0, 0, 1, 1], [], []>} : vector<128x128xbf16>, vector<128x128xbf16>, vector<128x128xf32> -> vector<128x128xf32>
    %3 = arith.truncf %2 : vector<128x128xf32> to vector<128x128xbf16>
    %c0_3 = arith.constant 0 : index
    %c0_4 = arith.constant 0 : index
    %4 = vector.load %arg3[%c0_3, %c0_4] : memref<128x128xbf16, #tpu.memory_space<vmem>>, vector<128x128xbf16>
    %cst_5 = arith.constant dense<0.000000e+00> : vector<128x128xf32>
    %5 = tpu.matmul %3, %4, %cst_5 {dimension_numbers = #tpu.dot_dimension_numbers<[1], [0], [0], [1], [0, 0, 1, 1], [], []>} : vector<128x128xbf16>, vector<128x128xbf16>, vector<128x128xf32> -> vector<128x128xf32>
    %c0_6 = arith.constant 0 : index
    %c0_7 = arith.constant 0 : index
    %6 = vector.load %arg4[%c0_6, %c0_7] : memref<8x128xf32, #tpu.memory_space<vmem>>, vector<8x128xf32>
    %7 = vector.extract_strided_slice %6 {offsets = [0, 0], sizes = [1, 128], strides = [1, 1]} : vector<8x128xf32> to vector<1x128xf32>
    %8 = vector.broadcast %7 : vector<1x128xf32> to vector<128x128xf32>
    %9 = arith.addf %5, %8 : vector<128x128xf32>
    %cst_8 = arith.constant 0.000000e+00 : f32
    %10 = vector.broadcast %cst_8 : f32 to vector<128x128xf32>
    %11 = arith.maximumf %9, %10 : vector<128x128xf32>
    %12 = arith.truncf %11 : vector<128x128xf32> to vector<128x128xbf16>
    %c0_9 = arith.constant 0 : index
    %c0_10 = arith.constant 0 : index
    %13 = vector.load %arg5[%c0_9, %c0_10] : memref<128x128xbf16, #tpu.memory_space<vmem>>, vector<128x128xbf16>
    %cst_11 = arith.constant dense<0.000000e+00> : vector<128x128xf32>
    %14 = tpu.matmul %12, %13, %cst_11 {dimension_numbers = #tpu.dot_dimension_numbers<[1], [0], [0], [1], [0, 0, 1, 1], [], []>} : vector<128x128xbf16>, vector<128x128xbf16>, vector<128x128xf32> -> vector<128x128xf32>
    %15 = arith.truncf %14 : vector<128x128xf32> to vector<128x128xbf16>
    %cst_12 = arith.constant dense<0.000000e+00> : vector<128x128xf32>
    %16 = tpu.matmul %0, %15, %cst_12 {dimension_numbers = #tpu.dot_dimension_numbers<[1], [0], [0], [1], [0, 0, 1, 1], [], []>} : vector<128x128xbf16>, vector<128x128xbf16>, vector<128x128xf32> -> vector<128x128xf32>
    %c0_13 = arith.constant 0 : index
    %c0_14 = arith.constant 0 : index
    %17 = vector.load %arg6[%c0_13, %c0_14] : memref<8x128xf32, #tpu.memory_space<vmem>>, vector<8x128xf32>
    %18 = vector.extract_strided_slice %17 {offsets = [0, 0], sizes = [1, 128], strides = [1, 1]} : vector<8x128xf32> to vector<1x128xf32>
    %19 = vector.broadcast %18 : vector<1x128xf32> to vector<128x128xf32>
    %20 = arith.addf %16, %19 : vector<128x128xf32>
    %21 = tpu.iota {dimensions = array<i32: 1>} : vector<128x128xi32>
    %c8_i32 = arith.constant 8 : i32
    %22 = vector.broadcast %c8_i32 : i32 to vector<128x128xi32>
    %23 = arith.cmpi slt, %21, %22 : vector<128x128xi32>
    %cst_15 = arith.constant 0xFF800000 : f32
    %24 = vector.broadcast %cst_15 : f32 to vector<128x128xf32>
    %25 = arith.select %23, %20, %24 : vector<128x128xi1>, vector<128x128xf32>
    %cst_16 = arith.constant dense<0xFF800000> : vector<128xf32>
    %26 = vector.multi_reduction <maximumf>, %25, %cst_16 [1] : vector<128x128xf32> to vector<128xf32>
    %27 = vector.shape_cast %26 : vector<128xf32> to vector<128x1xf32>
    %28 = vector.broadcast %27 : vector<128x1xf32> to vector<128x128xf32>
    %29 = arith.subf %20, %28 : vector<128x128xf32>
    %30 = math.exp %29 : vector<128x128xf32>
    %cst_17 = arith.constant 0.000000e+00 : f32
    %31 = vector.broadcast %cst_17 : f32 to vector<128x128xf32>
    %32 = arith.select %23, %30, %31 : vector<128x128xi1>, vector<128x128xf32>
    %cst_18 = arith.constant dense<0.000000e+00> : vector<128xf32>
    %33 = vector.multi_reduction <add>, %32, %cst_18 [1] : vector<128x128xf32> to vector<128xf32>
    %34 = vector.shape_cast %33 : vector<128xf32> to vector<128x1xf32>
    %35 = math.log %34 : vector<128x1xf32>
    %36 = arith.addf %27, %35 : vector<128x1xf32>
    %37 = vector.broadcast %36 : vector<128x1xf32> to vector<128x128xf32>
    %38 = arith.subf %20, %37 : vector<128x128xf32>
    %c0_19 = arith.constant 0 : index
    %c0_20 = arith.constant 0 : index
    %39 = vector.load %arg7[%c0_19, %c0_20] : memref<128x128xf32, #tpu.memory_space<vmem>>, vector<128x128xf32>
    tpu.vector_store %arg7[%c0_19, %c0_20], %38 {strides = array<i32>} : memref<128x128xf32, #tpu.memory_space<vmem>>, vector<128x128xf32>,
    return
  }
  func.func @transform_0(%arg0: i32) -> (i32, i32) {
    %c0_i32 = arith.constant 0 : i32
    %c0_i32_0 = arith.constant 0 : i32
    %c0_i32_1 = arith.constant 0 : i32
    return %c0_i32, %c0_i32_0 : i32, i32
  }
  func.func @transform_1(%arg0: i32) -> (i32, i32) {
    %c0_i32 = arith.constant 0 : i32
    %c0_i32_0 = arith.constant 0 : i32
    %c0_i32_1 = arith.constant 0 : i32
    return %c0_i32, %c0_i32_0 : i32, i32
  }
  func.func @transform_2(%arg0: i32) -> (i32, i32) {
    %c0_i32 = arith.constant 0 : i32
    %c0_i32_0 = arith.constant 0 : i32
    %c0_i32_1 = arith.constant 0 : i32
    return %c0_i32, %c0_i32_0 : i32, i32
  }
  func.func @transform_3(%arg0: i32) -> (i32, i32) {
    %c0_i32 = arith.constant 0 : i32
    %c0_i32_0 = arith.constant 0 : i32
    %c0_i32_1 = arith.constant 0 : i32
    return %c0_i32, %c0_i32_0 : i32, i32
  }
  func.func @transform_4(%arg0: i32) -> (i32, i32) {
    %c0_i32 = arith.constant 0 : i32
    %c0_i32_0 = arith.constant 0 : i32
    %c0_i32_1 = arith.constant 0 : i32
    return %c0_i32, %c0_i32_0 : i32, i32
  }
  func.func @transform_5(%arg0: i32) -> (i32, i32) {
    %c0_i32 = arith.constant 0 : i32
    %c0_i32_0 = arith.constant 0 : i32
    %c0_i32_1 = arith.constant 0 : i32
    return %c0_i32, %c0_i32_0 : i32, i32
  }
  func.func @transform_6(%arg0: i32) -> (i32, i32) {
    %c0_i32 = arith.constant 0 : i32
    %c0_i32_0 = arith.constant 0 : i32
    %c0_i32_1 = arith.constant 0 : i32
    return %c0_i32, %c0_i32_0 : i32, i32
  }
}

</mosaic_0001>

<bundles_post_ra>
// kernel: tpu_custom_call.1
= control target key start
LH: loop header
LB: loop body
LE: loop exit
PB: predicated region body
PF: predicated region fallthrough
CT: control target
= control target key end

     0   :  { %11 = vsyncpa [#allocation3], 0  ;;  %s1855_s0 = inlined_call_operand.hbm [shape: bf16[128,128], index: 0, kind: input, shape index: {}]   ;;  %s1856_s1 = inlined_call_operand.hbm [shape: bf16[128,128], index: 1, kind: input, shape index: {}]   ;;  %s1857_s2 = inlined_call_operand.hbm [shape: bf16[128,128], index: 2, kind: input, shape index: {}]   ;;  %s1858_s3 = inlined_call_operand.vmem [shape: f32[8,128], index: 3, kind: input, shape index: {}]   ;;  %s1859_s4 = inlined_call_operand.hbm [shape: bf16[128,128], index: 4, kind: input, shape index: {}]   ;;  %s1860_s5 = inlined_call_operand.vmem [shape: f32[8,128], index: 5, kind: input, shape index: {}]   ;;  %s1861_s6 = inlined_call_operand.hbm [shape: f32[128,128], index: 6, kind: output, shape index: {}]  }
   0x1   :  { %12 = vsyncpa [#allocation6], 0 }
   0x2   :  { %13 = vsyncpa [#allocation9], 0 }
   0x3   :  { %14 = vsyncpa [#allocation4], 0  ;;  %s1467_s21 = smov [#allocation5]   ;;  %s1468_s23 = smov [#allocation2]  }
   0x4   :  { %s32_s22 = sshll.u32 %s1467_s21, 4  ;;  %s20_s24 = sshll.u32 %s1468_s23, 4  ;;  %s33_s22 = int_to_ptr.vmem [resolvable:$true] %s32_s22  ;;  %s1511_s24 = int_to_ptr.vmem [resolvable:$true] %s20_s24 }
   0x5   :  { %s1349_s27 = scalar_lea.hbm %s1856_s1, 1024 }
   0x6   :  { %p1350_p0 = scmp.ne.s32.totalorder %s1856_s1, %s1349_s27  ;;  %p1353_p1 = scmp.lt.u32.totalorder %s1349_s27, %s1856_s1 }
   0x8   :  { %p1355_p2 = pnand %p1353_p1, %p1350_p0 }
   0xa   :  { %1358 = shalt.err (!%p1355_p2)
}
   0xb   :  { %s1359_s8 = scalar_lea.vmem %s33_s22, 1024  ;;  %p1364_p4 = scmp.lt.s32.totalorder %s33_s22, %s33_s22 }
   0xc   :  { %p1360_p3 = scmp.ne.s32.totalorder %s33_s22, %s1359_s8  ;;  %p1365_p5 = scmp.lt.s32.totalorder %s1359_s8, %s1359_s8 }
   0xe   :  { %p1366_p6 = por %p1365_p5, %p1364_p4 }
  0x10   :  { %p1367_p7 = pnand %p1366_p6, %p1360_p3 }
  0x12   :  { %1370 = shalt.err (!%p1367_p7)
}
  0x13   :  { %s1469_s9 = smov 64   ;;  %s1470_s10 = smov 4  }
  0x14   :  { %38 = dma.hbm_to_vmem [thread:$0]  %s1856_s1, 1024, %s33_s22, [#allocation6], %s1469_s9, %s1469_s9, %s1470_s10  }
  0x15   :  { %s1371_s15 = scalar_lea.hbm %s1855_s0, 1024 }
  0x16   :  { %p1372_p8 = scmp.ne.s32.totalorder %s1855_s0, %s1371_s15  ;;  %p1375_p9 = scmp.lt.u32.totalorder %s1371_s15, %s1855_s0 }
  0x18   :  { %p1377_p10 = pnand %p1375_p9, %p1372_p8 }
  0x1a   :  { %1380 = shalt.err (!%p1377_p10)
}
  0x1b   :  { %s1381_s20 = scalar_lea.vmem %s1511_s24, 1024  ;;  %p1386_p12 = scmp.lt.s32.totalorder %s1511_s24, %s1511_s24 }
  0x1c   :  { %p1382_p11 = scmp.ne.s32.totalorder %s1511_s24, %s1381_s20  ;;  %p1387_p13 = scmp.lt.s32.totalorder %s1381_s20, %s1381_s20 }
  0x1e   :  { %p1388_p0 = por %p1387_p13, %p1386_p12 }
  0x20   :  { %p1389_p1 = pnand %p1388_p0, %p1382_p11 }
  0x22   :  { %1392 = shalt.err (!%p1389_p1)
}
  0x23   :  { %26 = dma.hbm_to_vmem [thread:$0]  %s1855_s0, 1024, %s1511_s24, [#allocation3], %s1469_s9, %s1469_s9, %s1470_s10  }
  0x24   :  { %s1471_s22 = smov [#allocation7]   ;;  %s1472_s25 = smov [#allocation8]  }
  0x25   :  { %s44_s23 = sshll.u32 %s1471_s22, 4  ;;  %s58_s26 = sshll.u32 %s1472_s25, 4  ;;  %s45_s23 = int_to_ptr.vmem [resolvable:$true] %s44_s23  ;;  %s1548_s26 = int_to_ptr.vmem [resolvable:$true] %s58_s26 }
  0x26   :  { %s1393_s29 = scalar_lea.hbm %s1857_s2, 1024 }
  0x27   :  { %p1394_p2 = scmp.ne.s32.totalorder %s1857_s2, %s1393_s29  ;;  %p1397_p3 = scmp.lt.u32.totalorder %s1393_s29, %s1857_s2 }
  0x29   :  { %p1399_p4 = pnand %p1397_p3, %p1394_p2 }
  0x2b   :  { %1402 = shalt.err (!%p1399_p4)
}
  0x2c   :  { %s1403_s0 = scalar_lea.vmem %s45_s23, 1024  ;;  %p1408_p6 = scmp.lt.s32.totalorder %s45_s23, %s45_s23 }
  0x2d   :  { %p1404_p5 = scmp.ne.s32.totalorder %s45_s23, %s1403_s0  ;;  %p1409_p7 = scmp.lt.s32.totalorder %s1403_s0, %s1403_s0 }
  0x2f   :  { %p1410_p8 = por %p1409_p7, %p1408_p6 }
  0x31   :  { %p1411_p9 = pnand %p1410_p8, %p1404_p5 }
  0x33   :  { %1414 = shalt.err (!%p1411_p9)
}
  0x34   :  { %50 = dma.hbm_to_vmem [thread:$0]  %s1857_s2, 1024, %s45_s23, [#allocation6], %s1469_s9, %s1469_s9, %s1470_s10  }
  0x35   :  { %s1415_s15 = scalar_lea.hbm %s1859_s4, 1024 }
  0x36   :  { %p1416_p10 = scmp.ne.s32.totalorder %s1859_s4, %s1415_s15  ;;  %p1419_p11 = scmp.lt.u32.totalorder %s1415_s15, %s1859_s4 }
  0x38   :  { %p1421_p12 = pnand %p1419_p11, %p1416_p10 }
  0x3a   :  { %1424 = shalt.err (!%p1421_p12)
}
  0x3b   :  { %s1425_s20 = scalar_lea.vmem %s1548_s26, 1024  ;;  %p1430_p0 = scmp.lt.s32.totalorder %s1548_s26, %s1548_s26 }
  0x3c   :  { %p1426_p13 = scmp.ne.s32.totalorder %s1548_s26, %s1425_s20  ;;  %p1431_p1 = scmp.lt.s32.totalorder %s1425_s20, %s1425_s20 }
  0x3e   :  { %p1432_p2 = por %p1431_p1, %p1430_p0 }
  0x40   :  { %p1433_p3 = pnand %p1432_p2, %p1426_p13 }
  0x42   :  { %1436 = shalt.err (!%p1433_p3)
}
  0x43   :  { %64 = dma.hbm_to_vmem [thread:$0]  %s1859_s4, 1024, %s1548_s26, [#allocation9], %s1469_s9, %s1469_s9, %s1470_s10  }
  0x44   :  { %1459 = dma.done.wait [#allocation3], 1024  }
  0x45   :  { %1460 = vsyncadd [#allocation3], 4294966272 }
  0x46   :  { %1461 = dma.done.wait [#allocation6], 2048  }
  0x47   :  { %1462 = vsyncadd [#allocation6], 4294965248 }
  0x48   :  { %1463 = dma.done.wait [#allocation9], 1024  }
  0x49   :  { %1464 = vsyncadd [#allocation9], 4294966272  ;;  %v1253_v0 = vld [vmem:[#allocation5] sm:$0xff]   ;;  %v1254_v1 = vld [vmem:[#allocation5 + $0x8] sm:$0xff]   ;;  %v330_v56 = vlaneseq }
  0x4a   :  { %1116 = vmatprep.subr.bf16.mxu0 %v1253_v0  ;;  %v1255_v2 = vld [vmem:[#allocation5 + $0x10] sm:$0xff]   ;;  %v1256_v3 = vld [vmem:[#allocation5 + $0x18] sm:$0xff]   ;;  %v1585_v4 = vld [vmem:[#allocation2] sm:$0xff]  }
  0x4b   :  { %1117 = vmatpush3.bf16.msra.mxu0 %v1253_v0  ;;  %1132 = vmatprep.mubr.bf16.mxu0 %v1585_v4  ;;  %v1257_v5 = vld [vmem:[#allocation5 + $0x20] sm:$0xff]   ;;  %v1258_v6 = vld [vmem:[#allocation5 + $0x28] sm:$0xff]   ;;  %v1259_v9 = vld [vmem:[#allocation5 + $0x30] sm:$0xff]   ;;  %v1611_v57 = vshrl.u32 %v330_v56, 7 }
  0x4c   :  { %1118 = vmatprep.subr.bf16.mxu0 %v1254_v1  ;;  %v1269_v7 = vld [vmem:[#allocation7] sm:$0xff]   ;;  %v1270_v8 = vld [vmem:[#allocation7 + $0x8] sm:$0xff]   ;;  %v1271_v10 = vld [vmem:[#allocation7 + $0x10] sm:$0xff]  }
  0x4d   :  { %1148 = vmatprep.subr.bf16.mxu1 %v1269_v7  ;;  %v1260_v11 = vld [vmem:[#allocation5 + $0x38] sm:$0xff]   ;;  %v1273_v13 = vld [vmem:[#allocation7 + $0x20] sm:$0xff]   ;;  %v1588_v14 = vld [vmem:[#allocation2 + $0x8] sm:$0xff]   ;;  %v332_v58 = vsub.s32 0, %v1611_v57 }
  0x4e   :  { %1149 = vmatpush3.bf16.msra.mxu1 %v1269_v7  ;;  %v1272_v12 = vld [vmem:[#allocation7 + $0x18] sm:$0xff]   ;;  %v1590_v15 = vld [vmem:[#allocation2 + $0x10] sm:$0xff]   ;;  %v1274_v16 = vld [vmem:[#allocation7 + $0x28] sm:$0xff]  }
  0x4f   :  { %1119 = vmatpush3.bf16.msra.mxu0 %v1254_v1  ;;  %1150 = vmatprep.subr.bf16.mxu1 %v1270_v8  ;;  %v1275_v17 = vld [vmem:[#allocation7 + $0x30] sm:$0xff]   ;;  %v1594_v18 = vld [vmem:[#allocation2 + $0x18] sm:$0xff]   ;;  %v1596_v19 = vld [vmem:[#allocation2 + $0x20] sm:$0xff]  }
  0x50   :  { %1120 = vmatprep.subr.bf16.mxu0 %v1255_v2  ;;  %v1600_v20 = vld [vmem:[#allocation2 + $0x28] sm:$0xff]   ;;  %v1602_v21 = vld [vmem:[#allocation2 + $0x30] sm:$0xff]   ;;  %v1606_v22 = vld [vmem:[#allocation2 + $0x38] sm:$0xff]  }
  0x51   :  { %v1276_v23 = vld [vmem:[#allocation7 + $0x38] sm:$0xff]   ;;  %v1277_v24 = vld [vmem:[#allocation8] sm:$0xff]   ;;  %v1278_v25 = vld [vmem:[#allocation8 + $0x8] sm:$0xff]  }
  0x52   :  { %1151 = vmatpush3.bf16.msra.mxu1 %v1270_v8  ;;  %v1279_v26 = vld [vmem:[#allocation8 + $0x10] sm:$0xff]   ;;  %v1280_v27 = vld [vmem:[#allocation8 + $0x18] sm:$0xff]   ;;  %v1281_v28 = vld [vmem:[#allocation8 + $0x20] sm:$0xff]  }
  0x53   :  { %1121 = vmatpush3.bf16.msra.mxu0 %v1255_v2  ;;  %1152 = vmatprep.subr.bf16.mxu1 %v1271_v10  ;;  %v1282_v29 = vld [vmem:[#allocation8 + $0x28] sm:$0xff]   ;;  %v1283_v54 = vld [vmem:[#allocation8 + $0x30] sm:$0xff]   ;;  %v1284_v55 = vld [vmem:[#allocation8 + $0x38] sm:$0xff]  }
  0x54   :  { %1122 = vmatprep.subr.bf16.mxu0 %v1256_v3  ;;  %v329_v59 = vld [vmem:[%s1858_s3] sm:$0xff] }
  0x55   :  { %v333_v60 = vrot.slane %v329_v59, %v332_v58 }
  0x56   :  { %1153 = vmatpush3.bf16.msra.mxu1 %v1271_v10 }
  0x57   :  { %1123 = vmatpush3.bf16.msra.mxu0 %v1256_v3  ;;  %1154 = vmatprep.subr.bf16.mxu1 %v1272_v12 }
  0x58   :  { %1124 = vmatprep.subr.bf16.mxu0 %v1257_v5 }
  0x5a   :  { %1155 = vmatpush3.bf16.msra.mxu1 %v1272_v12 }
  0x5b   :  { %1125 = vmatpush3.bf16.msra.mxu0 %v1257_v5  ;;  %1156 = vmatprep.subr.bf16.mxu1 %v1273_v13 }
  0x5c   :  { %1126 = vmatprep.subr.bf16.mxu0 %v1258_v6 }
  0x5e   :  { %1157 = vmatpush3.bf16.msra.mxu1 %v1273_v13 }
  0x5f   :  { %1127 = vmatpush3.bf16.msra.mxu0 %v1258_v6  ;;  %1158 = vmatprep.subr.bf16.mxu1 %v1274_v16 }
  0x60   :  { %1128 = vmatprep.subr.bf16.mxu0 %v1259_v9 }
  0x62   :  { %1159 = vmatpush3.bf16.msra.mxu1 %v1274_v16 }
  0x63   :  { %1129 = vmatpush3.bf16.msra.mxu0 %v1259_v9  ;;  %1160 = vmatprep.subr.bf16.mxu1 %v1275_v17 }
  0x64   :  { %1130 = vmatprep.subr.bf16.mxu0 %v1260_v11 }
  0x66   :  { %1161 = vmatpush3.bf16.msra.mxu1 %v1275_v17 }
  0x67   :  { %1131 = vmatpush3.bf16.msra.mxu0 %v1260_v11  ;;  %1162 = vmatprep.subr.bf16.mxu1 %v1276_v23 }
  0x68   :  { %1180 = vmatprep.subr.bf16.mxu0 %v1277_v24 }
  0x6a   :  { %1133 = vmatmul.mubr.bf16.vlgmr.msra.gmra.mrb[0].mxu0 %v1588_v14  ;;  %1163 = vmatpush3.bf16.msra.mxu1 %v1276_v23 }
  0x6b   :  { %1136 = vmatprep.mubr.bf16.mxu0 %v1590_v15  ;;  %1181 = vmatpush3.bf16.msra.mxu0 %v1277_v24 }
  0x6c   :  { %1182 = vmatprep.subr.bf16.mxu0 %v1278_v25 }
  0x6f   :  { %1183 = vmatpush3.bf16.msra.mxu0 %v1278_v25 }
  0x70   :  { %1184 = vmatprep.subr.bf16.mxu0 %v1279_v26 }
  0x72   :  { %1137 = vmatmul.mubr.bf16.gmra.mrb[4].mxu0 %v1594_v18 }
  0x73   :  { %1140 = vmatprep.mubr.bf16.mxu0 %v1596_v19  ;;  %1185 = vmatpush3.bf16.msra.mxu0 %v1279_v26 }
  0x74   :  { %1186 = vmatprep.subr.bf16.mxu0 %v1280_v27 }
  0x77   :  { %1187 = vmatpush3.bf16.msra.mxu0 %v1280_v27 }
  0x78   :  { %1188 = vmatprep.subr.bf16.mxu0 %v1281_v28 }
  0x7a   :  { %1141 = vmatmul.mubr.bf16.gmra.mrb[8].mxu0 %v1600_v20 }
  0x7b   :  { %1144 = vmatprep.mubr.bf16.mxu0 %v1602_v21  ;;  %1189 = vmatpush3.bf16.msra.mxu0 %v1281_v28 }
  0x7c   :  { %1190 = vmatprep.subr.bf16.mxu0 %v1282_v29 }
  0x7f   :  { %1191 = vmatpush3.bf16.msra.mxu0 %v1282_v29 }
  0x80   :  { %1192 = vmatprep.subr.bf16.mxu0 %v1283_v54 }
  0x82   :  { %1145 = vmatmul.mubr.bf16.gmra.mrb[12].mxu0 %v1606_v22 }
  0x83   :  { %1193 = vmatpush3.bf16.msra.mxu0 %v1283_v54 }
  0x84   :  { %1194 = vmatprep.subr.bf16.mxu0 %v1284_v55 }
  0x87   :  { %1195 = vmatpush3.bf16.msra.mxu0 %v1284_v55 }
 0x13d   :  { %v1134_v30 = vpop.f32.mrb[0].mxu0 }
 0x13e   :  { %v242_v31 = vpop.f32.mrb[1].mxu0 }
 0x13f   :  { %v1135_v32 = vpop.f32.mrb[2].mxu0 }
 0x140   :  { %v306_v33 = vpack.c.bf16 %v1135_v32, %v1134_v30  ;;  %v245_v34 = vpop.f32.mrb[3].mxu0 }
 0x141   :  { %v305_v35 = vpack.c.bf16 %v245_v34, %v242_v31 }
 0x143   :  { %1164 = vmatprep.mubr.bf16.mxu1 %v305_v35 }
 0x144   :  { %1165 = vmatmul.mubr.bf16.vlgmr.msra.gmra.mrb[0].mxu1 %v306_v33 }
 0x145   :  { %v1138_v36 = vpop.f32.mrb[4].mxu0 }
 0x146   :  { %v258_v37 = vpop.f32.mrb[5].mxu0 }
 0x147   :  { %v1139_v38 = vpop.f32.mrb[6].mxu0 }
 0x148   :  { %v308_v39 = vpack.c.bf16 %v1139_v38, %v1138_v36  ;;  %v261_v40 = vpop.f32.mrb[7].mxu0 }
 0x149   :  { %v307_v41 = vpack.c.bf16 %v261_v40, %v258_v37 }
 0x14b   :  { %1168 = vmatprep.mubr.bf16.mxu1 %v307_v41 }
 0x14c   :  { %1169 = vmatmul.mubr.bf16.gmra.mrb[4].mxu1 %v308_v39 }
 0x14d   :  { %v1142_v42 = vpop.f32.mrb[8].mxu0 }
 0x14e   :  { %v274_v43 = vpop.f32.mrb[9].mxu0 }
 0x14f   :  { %v1143_v44 = vpop.f32.mrb[10].mxu0 }
 0x150   :  { %v310_v45 = vpack.c.bf16 %v1143_v44, %v1142_v42  ;;  %v277_v46 = vpop.f32.mrb[11].mxu0 }
 0x151   :  { %v309_v47 = vpack.c.bf16 %v277_v46, %v274_v43 }
 0x153   :  { %1172 = vmatprep.mubr.bf16.mxu1 %v309_v47 }
 0x154   :  { %1173 = vmatmul.mubr.bf16.gmra.mrb[8].mxu1 %v310_v45 }
 0x155   :  { %v1146_v48 = vpop.f32.mrb[12].mxu0 }
 0x156   :  { %v290_v49 = vpop.f32.mrb[13].mxu0 }
 0x157   :  { %v1147_v50 = vpop.f32.mrb[14].mxu0 }
 0x158   :  { %v312_v51 = vpack.c.bf16 %v1147_v50, %v1146_v48  ;;  %v293_v52 = vpop.f32.mrb[15].mxu0 }
 0x159   :  { %v311_v53 = vpack.c.bf16 %v293_v52, %v290_v49 }
 0x15b   :  { %1176 = vmatprep.mubr.bf16.mxu1 %v311_v53 }
 0x15c   :  { %1177 = vmatmul.mubr.bf16.gmra.mrb[12].mxu1 %v312_v51 }
 0x15d   :  { %1228 = vmatprep.mubr.bf16.mxu1 %v1585_v4 }
 0x217   :  { %v1166_v61 = vpop.f32.mrb[0].mxu1 }
 0x218   :  { %v425_v62 = vadd.f32 %v1166_v61, %v333_v60  ;;  %v416_v63 = vpop.f32.mrb[1].mxu1 }
 0x219   :  { %v417_v0 = vadd.f32 %v416_v63, %v333_v60  ;;  %v1167_v1 = vpop.f32.mrb[2].mxu1 }
 0x21a   :  { %v428_v2 = vadd.f32 %v1167_v1, %v333_v60  ;;  %v419_v3 = vpop.f32.mrb[3].mxu1  ;;  %v481_v5 = vmax.f32 %v425_v62, 0.0 }
 0x21b   :  { %v420_v4 = vadd.f32 %v419_v3, %v333_v60  ;;  %v479_v7 = vmax.f32 %v417_v0, 0.0 }
 0x21c   :  { %v482_v6 = vmax.f32 %v428_v2, 0.0 }
 0x21d   :  { %v480_v8 = vmax.f32 %v420_v4, 0.0 }
 0x21e   :  { %v496_v9 = vpack.c.bf16 %v482_v6, %v481_v5 }
 0x21f   :  { %v495_v10 = vpack.c.bf16 %v480_v8, %v479_v7  ;;  %v1170_v11 = vpop.f32.mrb[4].mxu1 }
 0x220   :  { %v441_v12 = vadd.f32 %v1170_v11, %v333_v60  ;;  %v432_v13 = vpop.f32.mrb[5].mxu1 }
 0x221   :  { %v433_v16 = vadd.f32 %v432_v13, %v333_v60  ;;  %v1171_v17 = vpop.f32.mrb[6].mxu1  ;;  %1196 = vmatprep.mubr.bf16.mxu0 %v495_v10 }
 0x222   :  { %v444_v23 = vadd.f32 %v1171_v17, %v333_v60  ;;  %v435_v24 = vpop.f32.mrb[7].mxu1  ;;  %1197 = vmatmul.mubr.bf16.vlgmr.msra.gmra.mrb[16].mxu0 %v496_v9  ;;  %v485_v26 = vmax.f32 %v441_v12, 0.0 }
 0x223   :  { %v436_v25 = vadd.f32 %v435_v24, %v333_v60  ;;  %v483_v28 = vmax.f32 %v433_v16, 0.0 }
 0x224   :  { %v486_v27 = vmax.f32 %v444_v23, 0.0 }
 0x225   :  { %v484_v29 = vmax.f32 %v436_v25, 0.0 }
 0x226   :  { %v498_v30 = vpack.c.bf16 %v486_v27, %v485_v26 }
 0x227   :  { %v497_v31 = vpack.c.bf16 %v484_v29, %v483_v28  ;;  %v1174_v32 = vpop.f32.mrb[8].mxu1 }
 0x228   :  { %v457_v33 = vadd.f32 %v1174_v32, %v333_v60  ;;  %v448_v34 = vpop.f32.mrb[9].mxu1 }
 0x229   :  { %v449_v35 = vadd.f32 %v448_v34, %v333_v60  ;;  %v1175_v36 = vpop.f32.mrb[10].mxu1  ;;  %1200 = vmatprep.mubr.bf16.mxu0 %v497_v31  ;;  %v1630_v31 = vand.u32 127, %v330_v56 }
 0x22a   :  { %v460_v37 = vadd.f32 %v1175_v36, %v333_v60  ;;  %v451_v38 = vpop.f32.mrb[11].mxu1  ;;  %1201 = vmatmul.mubr.bf16.gmra.mrb[20].mxu0 %v498_v30  ;;  %v489_v40 = vmax.f32 %v457_v33, 0.0  ;;  %v672_v30 = vld [vmem:[%s1860_s5] sm:$0xff]  ;;  %s1473_s5 = smov [#allocation10]  }
 0x22b   :  { %v452_v39 = vadd.f32 %v451_v38, %v333_v60  ;;  %v487_v42 = vmax.f32 %v449_v35, 0.0  ;;  %vm776_vm0 = vcmp.lt.s32.totalorder %v1630_v31, 8  ;;  %s1006_s21 = sshll.u32 %s1473_s5, 4  ;;  %s1007_s21 = int_to_ptr.vmem [resolvable:$true] %s1006_s21 }
 0x22c   :  { %v490_v41 = vmax.f32 %v460_v37, 0.0  ;;  %s1437_s22 = scalar_lea.vmem %s1007_s21, 2048  ;;  %p1442_p5 = scmp.lt.s32.totalorder %s1007_s21, %s1007_s21 }
 0x22d   :  { %v488_v43 = vmax.f32 %v452_v39, 0.0  ;;  %p1438_p4 = scmp.ne.s32.totalorder %s1007_s21, %s1437_s22  ;;  %p1443_p6 = scmp.lt.s32.totalorder %s1437_s22, %s1437_s22 }
 0x22e   :  { %v500_v44 = vpack.c.bf16 %v490_v41, %v489_v40 }
 0x22f   :  { %v499_v45 = vpack.c.bf16 %v488_v43, %v487_v42  ;;  %v1178_v46 = vpop.f32.mrb[12].mxu1  ;;  %p1444_p7 = por %p1443_p6, %p1442_p5 }
 0x230   :  { %v473_v47 = vadd.f32 %v1178_v46, %v333_v60  ;;  %v464_v48 = vpop.f32.mrb[13].mxu1 }
 0x231   :  { %v465_v49 = vadd.f32 %v464_v48, %v333_v60  ;;  %v1179_v50 = vpop.f32.mrb[14].mxu1  ;;  %1204 = vmatprep.mubr.bf16.mxu0 %v499_v45  ;;  %p1445_p8 = pnand %p1444_p7, %p1438_p4 }
 0x232   :  { %v476_v51 = vadd.f32 %v1179_v50, %v333_v60  ;;  %v467_v52 = vpop.f32.mrb[15].mxu1  ;;  %1205 = vmatmul.mubr.bf16.gmra.mrb[24].mxu0 %v500_v44  ;;  %v493_v54 = vmax.f32 %v473_v47, 0.0 }
 0x233   :  { %v468_v53 = vadd.f32 %v467_v52, %v333_v60  ;;  %v491_v59 = vmax.f32 %v465_v49, 0.0 }
 0x234   :  { %v494_v55 = vmax.f32 %v476_v51, 0.0 }
 0x235   :  { %v492_v61 = vmax.f32 %v468_v53, 0.0 }
 0x236   :  { %v502_v62 = vpack.c.bf16 %v494_v55, %v493_v54 }
 0x237   :  { %v501_v63 = vpack.c.bf16 %v492_v61, %v491_v59 }
 0x239   :  { %1208 = vmatprep.mubr.bf16.mxu0 %v501_v63 }
 0x23a   :  { %1209 = vmatmul.mubr.bf16.gmra.mrb[28].mxu0 %v502_v62 }
 0x2f5   :  { %v1198_v0 = vpop.f32.mrb[16].mxu0 }
 0x2f6   :  { %v601_v1 = vpop.f32.mrb[17].mxu0 }
 0x2f7   :  { %v1199_v2 = vpop.f32.mrb[18].mxu0 }
 0x2f8   :  { %v665_v3 = vpack.c.bf16 %v1199_v2, %v1198_v0  ;;  %v604_v4 = vpop.f32.mrb[19].mxu0 }
 0x2f9   :  { %v664_v5 = vpack.c.bf16 %v604_v4, %v601_v1 }
 0x2fb   :  { %1212 = vmatprep.subr.bf16.mxu1 %v664_v5 }
 0x2fc   :  { %1213 = vmatpush3.bf16.msra.mxu1 %v664_v5 }
 0x2fd   :  { %v1202_v6 = vpop.f32.mrb[20].mxu0  ;;  %1214 = vmatprep.subr.bf16.mxu1 %v665_v3 }
 0x2fe   :  { %v617_v7 = vpop.f32.mrb[21].mxu0 }
 0x2ff   :  { %v1203_v60 = vpop.f32.mrb[22].mxu0 }
 0x300   :  { %v667_v8 = vpack.c.bf16 %v1203_v60, %v1202_v6  ;;  %v620_v9 = vpop.f32.mrb[23].mxu0  ;;  %1215 = vmatpush3.bf16.msra.mxu1 %v665_v3 }
 0x301   :  { %v666_v10 = vpack.c.bf16 %v620_v9, %v617_v7 }
 0x303   :  { %1216 = vmatprep.subr.bf16.mxu1 %v666_v10 }
 0x304   :  { %1217 = vmatpush3.bf16.msra.mxu1 %v666_v10 }
 0x305   :  { %v1206_v11 = vpop.f32.mrb[24].mxu0  ;;  %1218 = vmatprep.subr.bf16.mxu1 %v667_v8 }
 0x306   :  { %v633_v12 = vpop.f32.mrb[25].mxu0 }
 0x307   :  { %v1207_v13 = vpop.f32.mrb[26].mxu0 }
 0x308   :  { %v669_v16 = vpack.c.bf16 %v1207_v13, %v1206_v11  ;;  %v636_v17 = vpop.f32.mrb[27].mxu0  ;;  %1219 = vmatpush3.bf16.msra.mxu1 %v667_v8 }
 0x309   :  { %v668_v23 = vpack.c.bf16 %v636_v17, %v633_v12 }
 0x30b   :  { %1220 = vmatprep.subr.bf16.mxu1 %v668_v23 }
 0x30c   :  { %1221 = vmatpush3.bf16.msra.mxu1 %v668_v23 }
 0x30d   :  { %v1210_v24 = vpop.f32.mrb[28].mxu0  ;;  %1222 = vmatprep.subr.bf16.mxu1 %v669_v16 }
 0x30e   :  { %v649_v25 = vpop.f32.mrb[29].mxu0 }
 0x30f   :  { %v1211_v26 = vpop.f32.mrb[30].mxu0 }
 0x310   :  { %v671_v27 = vpack.c.bf16 %v1211_v26, %v1210_v24  ;;  %v652_v28 = vpop.f32.mrb[31].mxu0  ;;  %1223 = vmatpush3.bf16.msra.mxu1 %v669_v16 }
 0x311   :  { %v670_v29 = vpack.c.bf16 %v652_v28, %v649_v25 }
 0x313   :  { %1224 = vmatprep.subr.bf16.mxu1 %v670_v29 }
 0x314   :  { %1225 = vmatpush3.bf16.msra.mxu1 %v670_v29 }
 0x315   :  { %1226 = vmatprep.subr.bf16.mxu1 %v671_v27 }
 0x318   :  { %1227 = vmatpush3.bf16.msra.mxu1 %v671_v27 }
 0x31b   :  { %1229 = vmatmul.mubr.bf16.vlgmr.msra.gmra.mrb[16].mxu1 %v1588_v14  ;;  %v676_v14 = vrot.slane %v672_v30, %v332_v58 }
 0x31c   :  { %1232 = vmatprep.mubr.bf16.mxu1 %v1590_v15 }
 0x323   :  { %1233 = vmatmul.mubr.bf16.gmra.mrb[20].mxu1 %v1594_v18 }
 0x324   :  { %1236 = vmatprep.mubr.bf16.mxu1 %v1596_v19 }
 0x32b   :  { %1237 = vmatmul.mubr.bf16.gmra.mrb[24].mxu1 %v1600_v20 }
 0x32c   :  { %1240 = vmatprep.mubr.bf16.mxu1 %v1602_v21 }
 0x333   :  { %1241 = vmatmul.mubr.bf16.gmra.mrb[28].mxu1 %v1606_v22 }
 0x3ee   :  { %v1230_v15 = vpop.f32.mrb[16].mxu1 }
 0x3ef   :  { %v1635_v18 = vadd.f32 %v1230_v15, %v676_v14  ;;  %v711_v19 = vpop.f32.mrb[17].mxu1 }
 0x3f0   :  { %v1637_v20 = vadd.f32 %v711_v19, %v676_v14  ;;  %v1231_v21 = vpop.f32.mrb[18].mxu1 }
 0x3f1   :  { %v1639_v22 = vadd.f32 %v1231_v21, %v676_v14  ;;  %v714_v32 = vpop.f32.mrb[19].mxu1  ;;  %v779_v56 = vsel %vm776_vm0, %v1635_v18, -inf }
 0x3f2   :  { %v1644_v33 = vadd.f32 %v714_v32, %v676_v14  ;;  %797 = vmax.xlane.f32.xlu1 %v779_v56  ;;  %v777_v57 = vsel %vm776_vm0, %v1637_v20, -inf }
 0x3f3   :  { %793 = vmax.xlane.f32.xlu0 %v777_v57  ;;  %v780_v58 = vsel %vm776_vm0, %v1639_v22, -inf }
 0x3f4   :  { %v778_v35 = vsel %vm776_vm0, %v1644_v33, -inf }
 0x3f6   :  { %799 = vmax.xlane.f32.xlu1 %v780_v58  ;;  %v1234_v34 = vpop.f32.mrb[20].mxu1 }
 0x3f7   :  { %v1655_v36 = vadd.f32 %v1234_v34, %v676_v14  ;;  %v727_v37 = vpop.f32.mrb[21].mxu1  ;;  %795 = vmax.xlane.f32.xlu0 %v778_v35 }
 0x3f8   :  { %v1235_v38 = vpop.f32.mrb[22].mxu1  ;;  %v1662_v42 = vadd.f32 %v727_v37, %v676_v14 }
 0x3f9   :  { %v1657_v39 = vadd.f32 %v1235_v38, %v676_v14  ;;  %v730_v40 = vpop.f32.mrb[23].mxu1  ;;  %v783_v41 = vsel %vm776_vm0, %v1655_v36, -inf }
 0x3fa   :  { %v1664_v43 = vadd.f32 %v730_v40, %v676_v14  ;;  %v781_v46 = vsel %vm776_vm0, %v1662_v42, -inf }
 0x3fb   :  { %805 = vmax.xlane.f32.xlu0 %v783_v41  ;;  %v784_v44 = vsel %vm776_vm0, %v1657_v39, -inf }
 0x3fc   :  { %807 = vmax.xlane.f32.xlu1 %v784_v44  ;;  %v782_v49 = vsel %vm776_vm0, %v1664_v43, -inf }
 0x3fe   :  { %v1238_v45 = vpop.f32.mrb[24].mxu1 }
 0x3ff   :  { %v1672_v47 = vadd.f32 %v1238_v45, %v676_v14  ;;  %v743_v48 = vpop.f32.mrb[25].mxu1  ;;  %801 = vmax.xlane.f32.xlu0 %v781_v46 }
 0x400   :  { %v1239_v50 = vpop.f32.mrb[26].mxu1  ;;  %803 = vmax.xlane.f32.xlu1 %v782_v49  ;;  %v1682_v54 = vadd.f32 %v743_v48, %v676_v14 }
 0x401   :  { %v1677_v51 = vadd.f32 %v1239_v50, %v676_v14  ;;  %v746_v52 = vpop.f32.mrb[27].mxu1  ;;  %v787_v53 = vsel %vm776_vm0, %v1672_v47, -inf }
 0x402   :  { %v1684_v55 = vadd.f32 %v746_v52, %v676_v14  ;;  %v785_v62 = vsel %vm776_vm0, %v1682_v54, -inf }
 0x403   :  { %813 = vmax.xlane.f32.xlu0 %v787_v53  ;;  %v788_v59 = vsel %vm776_vm0, %v1677_v51, -inf }
 0x404   :  { %815 = vmax.xlane.f32.xlu1 %v788_v59  ;;  %v786_v0 = vsel %vm776_vm0, %v1684_v55, -inf }
 0x406   :  { %v1242_v61 = vpop.f32.mrb[28].mxu1 }
 0x407   :  { %v759_v63 = vpop.f32.mrb[29].mxu1  ;;  %809 = vmax.xlane.f32.xlu0 %v785_v62  ;;  %v1697_v4 = vadd.f32 %v1242_v61, %v676_v14 }
 0x408   :  { %v1695_v1 = vadd.f32 %v759_v63, %v676_v14  ;;  %v1243_v2 = vpop.f32.mrb[30].mxu1  ;;  %811 = vmax.xlane.f32.xlu1 %v786_v0 }
 0x409   :  { %v762_v3 = vpop.f32.mrb[31].mxu1  ;;  %v1704_v7 = vadd.f32 %v1243_v2, %v676_v14  ;;  %v791_v8 = vsel %vm776_vm0, %v1697_v4, -inf }
 0x40a   :  { %v1699_v5 = vadd.f32 %v762_v3, %v676_v14  ;;  %v789_v6 = vsel %vm776_vm0, %v1695_v1, -inf }
 0x40b   :  { %817 = vmax.xlane.f32.xlu0 %v789_v6  ;;  %v792_v9 = vsel %vm776_vm0, %v1704_v7, -inf }
 0x40c   :  { %v790_v60 = vsel %vm776_vm0, %v1699_v5, -inf }
 0x40d   :  { %819 = vmax.xlane.f32.xlu1 %v790_v60 }
 0x40f   :  { %821 = vmax.xlane.f32.xlu0 %v791_v8 }
 0x411   :  { %823 = vmax.xlane.f32.xlu1 %v792_v9 }
 0x47f   :  { %v1715_v10 = vpop.xlane.xlu1 %797 }
 0x480   :  { %v827_v11 = vsub.f32 %v1635_v18, %v1715_v10  ;;  %v1719_v12 = vpop.xlane.xlu0 %793 }
 0x481   :  { %v825_v13 = vsub.f32 %v1637_v20, %v1719_v12 }
 0x482   :  { %v845_v16 = vmul.f32 1.442695, %v827_v11 }
 0x483   :  { %v841_v17 = vmul.f32 1.442695, %v825_v13  ;;  %v1723_v23 = vpop.xlane.xlu1 %799 }
 0x484   :  { %1285 = vpow2.f32 %v845_v16  ;;  %v828_v24 = vsub.f32 %v1639_v22, %v1723_v23  ;;  %v1727_v25 = vpop.xlane.xlu0 %795 }
 0x485   :  { %v826_v26 = vsub.f32 %v1644_v33, %v1727_v25  ;;  %1287 = vpow2.f32 %v841_v17 }
 0x486   :  { %v847_v27 = vmul.f32 1.442695, %v828_v24 }
 0x487   :  { %v843_v28 = vmul.f32 1.442695, %v826_v26 }
 0x488   :  { %1289 = vpow2.f32 %v847_v27  ;;  %v1731_v29 = vpop.xlane.xlu0 %805 }
 0x489   :  { %v831_v30 = vsub.f32 %v1655_v36, %v1731_v29  ;;  %v1735_v14 = vpop.xlane.xlu1 %807  ;;  %1291 = vpow2.f32 %v843_v28 }
 0x48a   :  { %v832_v15 = vsub.f32 %v1657_v39, %v1735_v14 }
 0x48b   :  { %v853_v19 = vmul.f32 1.442695, %v831_v30 }
 0x48c   :  { %v855_v21 = vmul.f32 1.442695, %v832_v15  ;;  %v1739_v32 = vpop.xlane.xlu0 %801 }
 0x48d   :  { %1293 = vpow2.f32 %v853_v19  ;;  %v829_v56 = vsub.f32 %v1662_v42, %v1739_v32  ;;  %v1743_v57 = vpop.xlane.xlu1 %803 }
 0x48e   :  { %v1286_v58 = vpop.eup %1285  ;;  %1295 = vpow2.f32 %v855_v21  ;;  %v830_v34 = vsub.f32 %v1664_v43, %v1743_v57 }
 0x48f   :  { %v849_v35 = vmul.f32 1.442695, %v829_v56  ;;  %v875_v37 = vsel %vm776_vm0, %v1286_v58, 0.0  ;;  %v1288_v38 = vpop.eup %1287 }
 0x490   :  { %v851_v40 = vmul.f32 1.442695, %v830_v34  ;;  %893 = vadd.xlane.f32.xlu0 %v875_v37  ;;  %v1749_v41 = vpop.xlane.xlu0 %813  ;;  %v873_v52 = vsel %vm776_vm0, %v1288_v38, 0.0 }
 0x491   :  { %1297 = vpow2.f32 %v849_v35  ;;  %v835_v44 = vsub.f32 %v1672_v47, %v1749_v41  ;;  %v1753_v45 = vpop.xlane.xlu1 %815 }
 0x492   :  { %v1290_v46 = vpop.eup %1289  ;;  %1299 = vpow2.f32 %v851_v40  ;;  %v836_v48 = vsub.f32 %v1677_v51, %v1753_v45 }
 0x493   :  { %v861_v49 = vmul.f32 1.442695, %v835_v44  ;;  %v876_v50 = vsel %vm776_vm0, %v1290_v46, 0.0  ;;  %v1292_v53 = vpop.eup %1291 }
 0x494   :  { %v863_v59 = vmul.f32 1.442695, %v836_v48  ;;  %895 = vadd.xlane.f32.xlu1 %v876_v50  ;;  %889 = vadd.xlane.f32.xlu0 %v873_v52  ;;  %v1761_v61 = vpop.xlane.xlu0 %809  ;;  %v874_v6 = vsel %vm776_vm0, %v1292_v53, 0.0 }
 0x495   :  { %1301 = vpow2.f32 %v861_v49  ;;  %v833_v62 = vsub.f32 %v1682_v54, %v1761_v61  ;;  %v1765_v63 = vpop.xlane.xlu1 %811 }
 0x496   :  { %1303 = vpow2.f32 %v863_v59  ;;  %v834_v0 = vsub.f32 %v1684_v55, %v1765_v63 }
 0x497   :  { %v1294_v2 = vpop.eup %1293  ;;  %v857_v3 = vmul.f32 1.442695, %v833_v62 }
 0x498   :  { %v1296_v60 = vpop.eup %1295  ;;  %v859_v8 = vmul.f32 1.442695, %v834_v0  ;;  %891 = vadd.xlane.f32.xlu1 %v874_v6  ;;  %v1771_v9 = vpop.xlane.xlu0 %817  ;;  %v879_v11 = vsel %vm776_vm0, %v1294_v2, 0.0 }
 0x499   :  { %1305 = vpow2.f32 %v857_v3  ;;  %v837_v13 = vsub.f32 %v1695_v1, %v1771_v9  ;;  %901 = vadd.xlane.f32.xlu0 %v879_v11  ;;  %v880_v27 = vsel %vm776_vm0, %v1296_v60, 0.0 }
 0x49a   :  { %1307 = vpow2.f32 %v859_v8  ;;  %v1777_v16 = vpop.xlane.xlu1 %819 }
 0x49b   :  { %v1298_v17 = vpop.eup %1297  ;;  %v865_v24 = vmul.f32 1.442695, %v837_v13  ;;  %v838_v26 = vsub.f32 %v1699_v5, %v1777_v16 }
 0x49c   :  { %v1300_v28 = vpop.eup %1299  ;;  %903 = vadd.xlane.f32.xlu1 %v880_v27  ;;  %v1783_v30 = vpop.xlane.xlu0 %821  ;;  %v877_v15 = vsel %vm776_vm0, %v1298_v17, 0.0 }
 0x49d   :  { %1309 = vpow2.f32 %v865_v24  ;;  %v867_v19 = vmul.f32 1.442695, %v838_v26  ;;  %v839_v21 = vsub.f32 %v1697_v4, %v1783_v30  ;;  %897 = vadd.xlane.f32.xlu0 %v877_v15  ;;  %v878_v37 = vsel %vm776_vm0, %v1300_v28, 0.0 }
 0x49e   :  { %v1789_v56 = vpop.xlane.xlu1 %823 }
 0x49f   :  { %v1302_v58 = vpop.eup %1301  ;;  %1311 = vpow2.f32 %v867_v19  ;;  %v869_v34 = vmul.f32 1.442695, %v839_v21  ;;  %v840_v35 = vsub.f32 %v1704_v7, %v1789_v56 }
 0x4a0   :  { %v1304_v38 = vpop.eup %1303  ;;  %899 = vadd.xlane.f32.xlu1 %v878_v37  ;;  %v883_v40 = vsel %vm776_vm0, %v1302_v58, 0.0 }
 0x4a1   :  { %1313 = vpow2.f32 %v869_v34  ;;  %v871_v44 = vmul.f32 1.442695, %v840_v35  ;;  %909 = vadd.xlane.f32.xlu0 %v883_v40  ;;  %v884_v48 = vsel %vm776_vm0, %v1304_v38, 0.0 }
 0x4a3   :  { %v1306_v46 = vpop.eup %1305  ;;  %1315 = vpow2.f32 %v871_v44 }
 0x4a4   :  { %v1308_v49 = vpop.eup %1307  ;;  %911 = vadd.xlane.f32.xlu1 %v884_v48  ;;  %v881_v50 = vsel %vm776_vm0, %v1306_v46, 0.0 }
 0x4a5   :  { %905 = vadd.xlane.f32.xlu0 %v881_v50  ;;  %v882_v53 = vsel %vm776_vm0, %v1308_v49, 0.0 }
 0x4a7   :  { %v1310_v52 = vpop.eup %1309 }
 0x4a8   :  { %907 = vadd.xlane.f32.xlu1 %v882_v53  ;;  %v885_v59 = vsel %vm776_vm0, %v1310_v52, 0.0 }
 0x4a9   :  { %v1312_v62 = vpop.eup %1311  ;;  %913 = vadd.xlane.f32.xlu0 %v885_v59 }
 0x4aa   :  { %v886_v0 = vsel %vm776_vm0, %v1312_v62, 0.0 }
 0x4ab   :  { %v1314_v2 = vpop.eup %1313 }
 0x4ac   :  { %915 = vadd.xlane.f32.xlu1 %v886_v0  ;;  %v887_v3 = vsel %vm776_vm0, %v1314_v2, 0.0 }
 0x4ad   :  { %v1316_v6 = vpop.eup %1315  ;;  %917 = vadd.xlane.f32.xlu0 %v887_v3 }
 0x4ae   :  { %v888_v60 = vsel %vm776_vm0, %v1316_v6, 0.0 }
 0x4b0   :  { %919 = vadd.xlane.f32.xlu1 %v888_v60 }
 0x51d   :  { %v894_v8 = vpop.xlane.xlu0 %893 }
 0x51e   :  { %1317 = vlog2.f32 %v894_v8 }
 0x521   :  { %v896_v11 = vpop.xlane.xlu1 %895  ;;  %v890_v13 = vpop.xlane.xlu0 %889 }
 0x522   :  { %1319 = vlog2.f32 %v896_v11 }
 0x523   :  { %1321 = vlog2.f32 %v890_v13 }
 0x525   :  { %v892_v17 = vpop.xlane.xlu1 %891 }
 0x526   :  { %1323 = vlog2.f32 %v892_v17  ;;  %v902_v24 = vpop.xlane.xlu0 %901 }
 0x527   :  { %1325 = vlog2.f32 %v902_v24 }
 0x528   :  { %v1318_v26 = vpop.eup %1317 }
 0x529   :  { %v926_v27 = vmul.f32 0.6931472, %v1318_v26  ;;  %v904_v28 = vpop.xlane.xlu1 %903 }
 0x52a   :  { %1327 = vlog2.f32 %v904_v28  ;;  %v898_v15 = vpop.xlane.xlu0 %897 }
 0x52b   :  { %v955_v19 = vadd.f32 %v926_v27, %v1715_v10  ;;  %1329 = vlog2.f32 %v898_v15 }
 0x52c   :  { %v1320_v31 = vpop.eup %1319 }
 0x52d   :  { %v1322_v21 = vpop.eup %1321  ;;  %v971_v58 = vsub.f32 %v1635_v18, %v955_v19  ;;  %v928_v34 = vmul.f32 0.6931472, %v1320_v31  ;;  %v900_v35 = vpop.xlane.xlu1 %899 }
 0x52e   :  { %v922_v37 = vmul.f32 0.6931472, %v1322_v21  ;;  %1331 = vlog2.f32 %v900_v35  ;;  %v910_v38 = vpop.xlane.xlu0 %909 }
 0x52f   :  { %987 = vst [vmem:[#allocation10 + $0x10] sm:$0xff] %v971_v58  ;;  %v956_v40 = vadd.f32 %v928_v34, %v1723_v23  ;;  %1333 = vlog2.f32 %v910_v38 }
 0x530   :  { %v1324_v44 = vpop.eup %1323  ;;  %v953_v46 = vadd.f32 %v922_v37, %v1719_v12 }
 0x531   :  { %v1326_v48 = vpop.eup %1325  ;;  %v972_v10 = vsub.f32 %v1639_v22, %v956_v40  ;;  %v924_v49 = vmul.f32 0.6931472, %v1324_v44  ;;  %v912_v50 = vpop.xlane.xlu1 %911 }
 0x532   :  { %v969_v52 = vsub.f32 %v1637_v20, %v953_v46  ;;  %v934_v18 = vmul.f32 0.6931472, %v1326_v48  ;;  %1335 = vlog2.f32 %v912_v50  ;;  %v906_v53 = vpop.xlane.xlu0 %905 }
 0x533   :  { %988 = vst [vmem:[#allocation10 + $0x18] sm:$0xff] %v972_v10  ;;  %v954_v59 = vadd.f32 %v924_v49, %v1727_v25  ;;  %1337 = vlog2.f32 %v906_v53 }
 0x534   :  { %v1328_v62 = vpop.eup %1327  ;;  %985 = vst [vmem:[#allocation10] sm:$0xff] %v969_v52  ;;  %v959_v23 = vadd.f32 %v934_v18, %v1731_v29 }
 0x535   :  { %v1330_v0 = vpop.eup %1329  ;;  %v970_v12 = vsub.f32 %v1644_v33, %v954_v59  ;;  %v936_v2 = vmul.f32 0.6931472, %v1328_v62  ;;  %v908_v22 = vpop.xlane.xlu1 %907 }
 0x536   :  { %v975_v3 = vsub.f32 %v1655_v36, %v959_v23  ;;  %v930_v6 = vmul.f32 0.6931472, %v1330_v0  ;;  %1339 = vlog2.f32 %v908_v22  ;;  %v914_v20 = vpop.xlane.xlu0 %913 }
 0x537   :  { %986 = vst [vmem:[#allocation10 + $0x8] sm:$0xff] %v970_v12  ;;  %v960_v60 = vadd.f32 %v936_v2, %v1735_v14  ;;  %1341 = vlog2.f32 %v914_v20 }
 0x538   :  { %v1332_v25 = vpop.eup %1331  ;;  %991 = vst [vmem:[#allocation10 + $0x30] sm:$0xff] %v975_v3  ;;  %v957_v8 = vadd.f32 %v930_v6, %v1739_v32 }
 0x539   :  { %v1334_v11 = vpop.eup %1333  ;;  %v976_v29 = vsub.f32 %v1657_v39, %v960_v60  ;;  %v932_v13 = vmul.f32 0.6931472, %v1332_v25  ;;  %v916_v33 = vpop.xlane.xlu1 %915 }
 0x53a   :  { %v973_v17 = vsub.f32 %v1662_v42, %v957_v8  ;;  %v942_v24 = vmul.f32 0.6931472, %v1334_v11  ;;  %1343 = vlog2.f32 %v916_v33  ;;  %v918_v36 = vpop.xlane.xlu0 %917 }
 0x53b   :  { %992 = vst [vmem:[#allocation10 + $0x38] sm:$0xff] %v976_v29  ;;  %v958_v26 = vadd.f32 %v932_v13, %v1743_v57  ;;  %1345 = vlog2.f32 %v918_v36 }
 0x53c   :  { %v1336_v14 = vpop.eup %1335  ;;  %989 = vst [vmem:[#allocation10 + $0x20] sm:$0xff] %v973_v17  ;;  %v963_v27 = vadd.f32 %v942_v24, %v1749_v41 }
 0x53d   :  { %v1338_v28 = vpop.eup %1337  ;;  %v974_v32 = vsub.f32 %v1664_v43, %v958_v26  ;;  %v944_v15 = vmul.f32 0.6931472, %v1336_v14  ;;  %v920_v39 = vpop.xlane.xlu1 %919 }
 0x53e   :  { %v979_v19 = vsub.f32 %v1672_v47, %v963_v27  ;;  %v938_v31 = vmul.f32 0.6931472, %v1338_v28  ;;  %1347 = vlog2.f32 %v920_v39 }
 0x53f   :  { %990 = vst [vmem:[#allocation10 + $0x28] sm:$0xff] %v974_v32  ;;  %v964_v42 = vadd.f32 %v944_v15, %v1753_v45 }
 0x540   :  { %v1340_v21 = vpop.eup %1339  ;;  %995 = vst [vmem:[#allocation10 + $0x50] sm:$0xff] %v979_v19  ;;  %v961_v57 = vadd.f32 %v938_v31, %v1761_v61 }
 0x541   :  { %v1342_v58 = vpop.eup %1341  ;;  %v980_v34 = vsub.f32 %v1677_v51, %v964_v42  ;;  %v940_v41 = vmul.f32 0.6931472, %v1340_v21 }
 0x542   :  { %v977_v35 = vsub.f32 %v1682_v54, %v961_v57  ;;  %v946_v43 = vmul.f32 0.6931472, %v1342_v58 }
 0x543   :  { %996 = vst [vmem:[#allocation10 + $0x58] sm:$0xff] %v980_v34  ;;  %v962_v37 = vadd.f32 %v940_v41, %v1765_v63 }
 0x544   :  { %v1344_v47 = vpop.eup %1343  ;;  %993 = vst [vmem:[#allocation10 + $0x40] sm:$0xff] %v977_v35  ;;  %v965_v38 = vadd.f32 %v946_v43, %v1771_v9 }
 0x545   :  { %v1346_v40 = vpop.eup %1345  ;;  %v978_v45 = vsub.f32 %v1684_v55, %v962_v37  ;;  %v948_v44 = vmul.f32 0.6931472, %v1344_v47 }
 0x546   :  { %v981_v61 = vsub.f32 %v1695_v1, %v965_v38  ;;  %v950_v46 = vmul.f32 0.6931472, %v1346_v40 }
 0x547   :  { %994 = vst [vmem:[#allocation10 + $0x48] sm:$0xff] %v978_v45  ;;  %v966_v51 = vadd.f32 %v948_v44, %v1777_v16 }
 0x548   :  { %v1348_v48 = vpop.eup %1347  ;;  %997 = vst [vmem:[#allocation10 + $0x60] sm:$0xff] %v981_v61  ;;  %v967_v54 = vadd.f32 %v950_v46, %v1783_v30 }
 0x549   :  { %v982_v63 = vsub.f32 %v1699_v5, %v966_v51  ;;  %v952_v10 = vmul.f32 0.6931472, %v1348_v48 }
 0x54a   :  { %v983_v49 = vsub.f32 %v1697_v4, %v967_v54 }
 0x54b   :  { %998 = vst [vmem:[#allocation10 + $0x68] sm:$0xff] %v982_v63  ;;  %v968_v55 = vadd.f32 %v952_v10, %v1789_v56 }
 0x54c   :  { %999 = vst [vmem:[#allocation10 + $0x70] sm:$0xff] %v983_v49 }
 0x54d   :  { %v984_v1 = vsub.f32 %v1704_v7, %v968_v55 }
 0x54f   :  { %1000 = vst [vmem:[#allocation10 + $0x78] sm:$0xff] %v984_v1 }
 0x550   :  { %1448 = shalt.err (!%p1445_p8)
}
 0x551   :  { %s1449_s26 = scalar_lea.hbm %s1861_s6, 2048 }
 0x552   :  { %p1450_p9 = scmp.ne.s32.totalorder %s1861_s6, %s1449_s26  ;;  %p1453_p10 = scmp.lt.u32.totalorder %s1449_s26, %s1861_s6 }
 0x554   :  { %p1455_p11 = pnand %p1453_p10, %p1450_p9 }
 0x556   :  { %1458 = shalt.err (!%p1455_p11)
}
 0x557   :  { %s1474_s7 = smov 128   ;;  %s1475_s8 = smov 8  }
 0x558   :  { %1012 = dma.vmem_to_hbm [thread:$0]  %s1007_s21, 2048, %s1861_s6, [#allocation4], %s1474_s7, %s1474_s7, %s1475_s8  }
 0x559   :  { %1465 = dma.done.wait [#allocation4], 2048  }
 0x55a   :  { %1466 = vsyncadd [#allocation4], 4294965248 }
 0x55b   :  { %1016 = vsyncpa [#allocation3], 1 }
 0x55c   :  { %1017 = vsyncpa [#allocation6], 1 }
 0x55d   :  { %1018 = vsyncpa [#allocation9], 1 }
 0x55e   :  { %1019 = vsyncpa [#allocation4], 1 }

</bundles_post_ra>
